<compile_context>
chip_gen: v6e
topology: v6e:2x2x1
jax: 0.10.0
libtpu: 0.0.40
codegen_flags: <defaults>
</compile_context>

<pallas_src>
import functools

import jax
import jax.numpy as jnp
from jax.experimental import pallas as pl
from jax.experimental.pallas import tpu as pltpu

_MIB = 1024 * 1024


def _device_kind():
    try:
        return jax.devices()[0].device_kind.lower()
    except Exception:
        return ""


def _is_pre_v6(kind):
    # v5e (and older) VPU has no bf16 VALU -> keep elementwise work in f32 there.
    return any(tag in kind for tag in ("v2", "v3", "v4", "v5"))


def _is_v7(kind):
    return ("v7" in kind) or ("tpu7" in kind) or ("7x" in kind)


def _vmem_limit_bytes(kind):
    # Never request the whole physical VMEM (v7x has only 64 MiB per TensorCore).
    try:
        cap = int(pltpu.get_tpu_info().vmem_capacity_bytes)
        return int(min(64 * _MIB, (cap * 3) // 4))
    except Exception:
        pass
    return 48 * _MIB if _is_v7(kind) else 64 * _MIB


def _choose_tiling(hw, target):
    """Pixel tile T (multiple of 128) and padded HW (multiple of T).

    Prefers a T that exactly divides the 128-aligned HW; if HW has no reasonable
    multiple-of-128 divisor, HW is padded up to a multiple of the target tile
    instead of falling back to one giant (VMEM-blowing) tile.
    """
    hw128 = -(-hw // 128) * 128
    t_max = min(max(128, (target // 128) * 128), hw128)
    best = 128
    for cand in range(t_max, 127, -128):
        if hw128 % cand == 0:
            best = cand
            break
    if best * 2 >= t_max:
        return best, hw128
    return t_max, -(-hw // t_max) * t_max


def _tile_compute(x_ref, w1_ref, w2_ref, w3_ref, *, bf16_path):
    """Per-tile compute. x (C_in, T) f32; w1 (256, C_in) bf16; w2 (128, 256) bf16;
    w3 is (8, 128) bf16 (row 0 = weights) on the bf16/MXU path, (128, 1) f32 on
    the f32/VPU path."""
    x = x_ref[...].astype(jnp.bfloat16)                       # cast at MXU boundary
    if bf16_path:
        # v6e/v7x: bf16 intermediates + bf16 ReLU (VPU has bf16 VALU). The MXU
        # still accumulates in f32; the bf16 cast folds into the result pop.
        h1 = jnp.dot(w1_ref[...], x,
                     preferred_element_type=jnp.float32).astype(jnp.bfloat16)
        h1 = jnp.maximum(h1, 0.0)                             # (256, T) bf16
        h2 = jnp.dot(w2_ref[...], h1,
                     preferred_element_type=jnp.float32).astype(jnp.bfloat16)
        h2 = jnp.maximum(h2, 0.0)                             # (128, T) bf16
        # conv3 on the (slack) MXU: w3 padded to a native (8, 128) LHS, take row 0.
        logits = jnp.dot(w3_ref[...], h2,
                         preferred_element_type=jnp.float32)[0:1, :]   # (1, T) f32
    else:
        # v5e: f32 elementwise; conv3 off the MXU (broadcast-mul + sublane reduce).
        h1 = jnp.maximum(
            jnp.dot(w1_ref[...], x, preferred_element_type=jnp.float32), 0.0)
        h2 = jnp.maximum(
            jnp.dot(w2_ref[...], h1.astype(jnp.bfloat16),
                    preferred_element_type=jnp.float32), 0.0)          # (128, T) f32
        logits = jnp.sum(h2 * w3_ref[...], axis=0, keepdims=True)      # (1, T) f32
    return h2, logits


def _ldc_kernel(x_ref, w1_ref, w2_ref, w3_ref, out_ref, *, bf16_path):
    _, logits = _tile_compute(x_ref, w1_ref, w2_ref, w3_ref, bf16_path=bf16_path)
    out_ref[...] = jax.nn.sigmoid(logits)                     # (1, T) lane-dense


def _ldc_kernel_context(x_ref, w1_ref, w2_ref, w3_ref, out_ref, feat_ref, *,
                        inv_hw, bf16_path):
    h2, logits = _tile_compute(x_ref, w1_ref, w2_ref, w3_ref, bf16_path=bf16_path)
    out_ref[...] = jax.nn.sigmoid(logits)

    k = pl.program_id(2)          # pixel-tile (sequential, "arbitrary") axis

    @pl.when(k == 0)
    def _():
        feat_ref[...] = jnp.zeros_like(feat_ref)

    # Running mean over spatial positions (== F.avg_pool2d(x, (H, W))); zero-padded
    # pixels contribute exactly 0 to h2, and inv_hw uses the true H*W.
    # TODO(synk): on v6e/v7x this row-sum could also ride the slack MXU as
    # h2 @ ones((T,1)); kept on the VPU to avoid relying on N=1 matmul lowering.
    feat_ref[...] += jnp.sum(h2, axis=1, keepdims=True, dtype=jnp.float32) * inv_hw


def local_domain_classifier(x_nchw, w1, w2, w3, *, context=False, tile_hw=8192,
                            bf16_path=None, feat_splits=None):
    """LocalDomainClassifier forward.

    x_nchw: (N, C_in, H, W) f32; w1: (256, C_in); w2: (128, 256); w3: (1, 128)
    (PyTorch 1x1-conv weights with the trailing kernel dims squeezed).
    """
    kind = _device_kind()
    if bf16_path is None:
        bf16_path = not _is_pre_v6(kind)

    n, c_in, h, w = x_nchw.shape
    hw = h * w
    t, hw_pad = _choose_tiling(hw, tile_hw)
    nk = hw_pad // t

    # NCHW -> (N, C_in, HW): pure reshape; channels on sublanes, pixels on lanes.
    x_rows = x_nchw.reshape(n, c_in, hw)
    if hw_pad != hw:
        x_rows = jnp.pad(x_rows, ((0, 0), (0, 0), (0, hw_pad - hw)))

    w1b = w1.astype(jnp.bfloat16)                              # (256, C_in)
    w2b = w2.astype(jnp.bfloat16)                              # (128, 256)
    if bf16_path:
        # conv3 on MXU: pad to (8, 128) so every matmul dim is a native tile size.
        w3p = jnp.zeros((8, 128), jnp.bfloat16).at[0, :].set(
            w3[0].astype(jnp.bfloat16))
    else:
        w3p = jnp.transpose(w3, (1, 0)).astype(jnp.float32)    # (128, 1) VPU column
    w3_shape = w3p.shape

    vmem_limit = _vmem_limit_bytes(kind)

    flops = 2 * n * hw_pad * (c_in * 256 + 256 * 128 + 128)
    bytes_accessed = (
        x_rows.size * 4 + n * hw_pad * 4
        + w1b.size * 2 + w2b.size * 2 + w3p.size * w3p.dtype.itemsize
        + (n * 128 * 4 if context else 0))
    cost = pl.CostEstimate(flops=flops, transcendentals=n * hw_pad,
                           bytes_accessed=bytes_accessed)

    if context:
        # Split the pixel-tile reduction so v7x's 2 TensorCores both see a
        # "parallel" axis at small batch; partial feats are summed in the wrapper.
        splits = feat_splits
        if splits is None:
            splits = 2 if _is_v7(kind) else 1
        if splits < 1 or nk % splits != 0:
            splits = 1
        nk_s = nk // splits

        in_specs = [
            pl.BlockSpec((None, c_in, t), lambda b, s, k: (b, 0, s * nk_s + k)),
            pl.BlockSpec((256, c_in), lambda b, s, k: (0, 0)),   # resident weights
            pl.BlockSpec((128, 256), lambda b, s, k: (0, 0)),
            pl.BlockSpec(w3_shape, lambda b, s, k: (0, 0)),
        ]
        out_specs = [
            pl.BlockSpec((None, 1, t), lambda b, s, k: (b, 0, s * nk_s + k)),
            pl.BlockSpec((None, None, 128, 1), lambda b, s, k: (b, s, 0, 0)),
        ]
        out, feat = pl.pallas_call(
            functools.partial(_ldc_kernel_context, inv_hw=1.0 / hw,
                              bf16_path=bf16_path),
            out_shape=(
                jax.ShapeDtypeStruct((n, 1, hw_pad), jnp.float32),
                jax.ShapeDtypeStruct((n, splits, 128, 1), jnp.float32),
            ),
            grid_spec=pltpu.PrefetchScalarGridSpec(
                num_scalar_prefetch=0,
                grid=(n, splits, nk_s),          # feat-accumulation axis last
                in_specs=in_specs,
                out_specs=out_specs,
            ),
            compiler_params=pltpu.CompilerParams(
                dimension_semantics=("parallel", "parallel", "arbitrary"),
                vmem_limit_bytes=vmem_limit,
            ),
            cost_estimate=cost,
        )(x_rows, w1b, w2b, w3p)
        out = out[:, :, :hw].reshape(n, 1, h, w)
        feat = jnp.sum(feat, axis=1).reshape(n, 128, 1, 1)
        return out, feat

    in_specs = [
        pl.BlockSpec((None, c_in, t), lambda b, k: (b, 0, k)),
        pl.BlockSpec((256, c_in), lambda b, k: (0, 0)),
        pl.BlockSpec((128, 256), lambda b, k: (0, 0)),
        pl.BlockSpec(w3_shape, lambda b, k: (0, 0)),
    ]
    out = pl.pallas_call(
        functools.partial(_ldc_kernel, bf16_path=bf16_path),
        out_shape=jax.ShapeDtypeStruct((n, 1, hw_pad), jnp.float32),
        grid_spec=pltpu.PrefetchScalarGridSpec(
            num_scalar_prefetch=0,
            grid=(n, nk),
            in_specs=in_specs,
            out_specs=pl.BlockSpec((None, 1, t), lambda b, k: (b, 0, k)),
        ),
        compiler_params=pltpu.CompilerParams(
            # No cross-tile reduction here: both axes can shard across cores.
            dimension_semantics=("parallel", "parallel"),
            vmem_limit_bytes=vmem_limit,
        ),
        cost_estimate=cost,
    )(x_rows, w1b, w2b, w3p)
    return out[:, :, :hw].reshape(n, 1, h, w)


def _reference(x_nchw, w1, w2, w3, *, context=False):
    # Pure-JAX f32 reference of the PyTorch forward (1x1 convs == channel matmuls).
    def conv1x1(x, wt):  # x: NCHW, wt: (Cout, Cin)
        return jnp.einsum("nchw,oc->nohw", x, wt)

    h1 = jax.nn.relu(conv1x1(x_nchw, w1))
    h2 = jax.nn.relu(conv1x1(h1, w2))
    out = jax.nn.sigmoid(conv1x1(h2, w3))
    if context:
        feat = jnp.mean(h2, axis=(2, 3), keepdims=True)
        return out, feat
    return out


if __name__ == "__main__":
    key = jax.random.PRNGKey(0)
    k_x, k1, k2, k3 = jax.random.split(key, 4)

    # Small shapes: batch=2, input_channels=32, spatial 32x32 (HW=1024 -> 4 tiles of 256).
    N, C_IN, H, W = 2, 32, 32, 32
    x = jax.random.normal(k_x, (N, C_IN, H, W), dtype=jnp.float32)

    # normal_init(m, 0, 0.01): weight ~ N(0, 0.01); 1x1 kernel dims squeezed.
    w1 = 0.01 * jax.random.normal(k1, (256, C_IN), dtype=jnp.float32)
    w2 = 0.01 * jax.random.normal(k2, (128, 256), dtype=jnp.float32)
    w3 = 0.01 * jax.random.normal(k3, (1, 128), dtype=jnp.float32)

    ref_sig, ref_feat = _reference(x, w1, w2, w3, context=True)

    # context=True, bf16/MXU-tail path, 4 pixel tiles with the 2-way (v7x) split.
    sig, feat = jax.jit(functools.partial(
        local_domain_classifier, context=True, tile_hw=256, bf16_path=True,
        feat_splits=2))(x, w1, w2, w3)
    jax.block_until_ready((sig, feat))
    assert sig.shape == (N, 1, H, W) and feat.shape == (N, 128, 1, 1)
    assert jnp.allclose(sig, ref_sig, atol=2e-3, rtol=2e-2)
    assert jnp.allclose(feat, ref_feat, atol=2e-3, rtol=5e-2)

    # context=True, f32-elementwise / VPU-conv3 path (v5e variant), no split.
    sig5, feat5 = jax.jit(functools.partial(
        local_domain_classifier, context=True, tile_hw=256, bf16_path=False,
        feat_splits=1))(x, w1, w2, w3)
    jax.block_until_ready((sig5, feat5))
    assert jnp.allclose(sig5, ref_sig, atol=2e-3, rtol=2e-2)
    assert jnp.allclose(feat5, ref_feat, atol=2e-3, rtol=5e-2)

    # context=False (module default): auto chip detection + default (large) tile.
    sig_only = jax.jit(functools.partial(local_domain_classifier))(x, w1, w2, w3)
    jax.block_until_ready(sig_only)
    assert jnp.allclose(sig_only, ref_sig, atol=2e-3, rtol=2e-2)

    # Non-128-divisible spatial shape -> zero-padded pixel tiles (feat unaffected).
    Hp, Wp = 30, 30
    xp = jax.random.normal(k_x, (N, C_IN, Hp, Wp), dtype=jnp.float32)
    ref_sig_p, ref_feat_p = _reference(xp, w1, w2, w3, context=True)
    sig_p, feat_p = jax.jit(functools.partial(
        local_domain_classifier, context=True, tile_hw=256))(xp, w1, w2, w3)
    jax.block_until_ready((sig_p, feat_p))
    assert sig_p.shape == (N, 1, Hp, Wp)
    assert jnp.allclose(sig_p, ref_sig_p, atol=2e-3, rtol=2e-2)
    assert jnp.allclose(feat_p, ref_feat_p, atol=2e-3, rtol=5e-2)

    print("KERNEL_OK")
</pallas_src>

<mosaic_0001>
module attributes {stable_mosaic.version = 11 : i64} {
  func.func @_ldc_kernel_context(%arg0: i32, %arg1: i32, %arg2: i32, %arg3: memref<1x32x256xf32, #tpu.memory_space<vmem>>, %arg4: memref<256x32xbf16, #tpu.memory_space<vmem>>, %arg5: memref<128x256xbf16, #tpu.memory_space<vmem>>, %arg6: memref<8x128xbf16, #tpu.memory_space<vmem>>, %arg7: memref<1x1x256xf32, #tpu.memory_space<vmem>>, %arg8: memref<1x1x128x1xf32, #tpu.memory_space<vmem>>) attributes {dimension_semantics = [#tpu.dimension_semantics<parallel>, #tpu.dimension_semantics<parallel>, #tpu.dimension_semantics<arbitrary>], iteration_bounds = array<i64: 2, 2, 2>, scalar_prefetch = 0 : i64, scratch_operands = 0 : i64, tpu.core_type = #tpu.core_type<tc>, window_params = [{transform_indices = @transform_0, window_bounds = array<i64: 1, 32, 256>}, {pipeline_mode = #tpu.pipeline_mode<synchronous>, transform_indices = @transform_1, window_bounds = array<i64: 256, 32>}, {pipeline_mode = #tpu.pipeline_mode<synchronous>, transform_indices = @transform_2, window_bounds = array<i64: 128, 256>}, {pipeline_mode = #tpu.pipeline_mode<synchronous>, transform_indices = @transform_3, window_bounds = array<i64: 8, 128>}, {transform_indices = @transform_4, window_bounds = array<i64: 1, 1, 256>}, {transform_indices = @transform_5, window_bounds = array<i64: 1, 1, 128, 1>}]} {
    %c0 = arith.constant 0 : index
    %c0_0 = arith.constant 0 : index
    %c0_1 = arith.constant 0 : index
    %0 = vector.load %arg3[%c0, %c0_0, %c0_1] : memref<1x32x256xf32, #tpu.memory_space<vmem>>, vector<1x32x256xf32>
    %1 = vector.shape_cast %0 : vector<1x32x256xf32> to vector<32x256xf32>
    %2 = arith.truncf %1 : vector<32x256xf32> to vector<32x256xbf16>
    %c0_2 = arith.constant 0 : index
    %c0_3 = arith.constant 0 : index
    %3 = vector.load %arg4[%c0_2, %c0_3] : memref<256x32xbf16, #tpu.memory_space<vmem>>, vector<256x32xbf16>
    %cst = arith.constant dense<0.000000e+00> : vector<256x256xf32>
    %4 = tpu.matmul %3, %2, %cst {dimension_numbers = #tpu.dot_dimension_numbers<[1], [0], [0], [1], [0, 0, 1, 1], [], []>} : vector<256x32xbf16>, vector<32x256xbf16>, vector<256x256xf32> -> vector<256x256xf32>
    %5 = arith.truncf %4 : vector<256x256xf32> to vector<256x256xbf16>
    %cst_4 = arith.constant 0.000000e+00 : bf16
    %6 = vector.broadcast %cst_4 : bf16 to vector<256x256xbf16>
    %7 = arith.maximumf %5, %6 : vector<256x256xbf16>
    %c0_5 = arith.constant 0 : index
    %c0_6 = arith.constant 0 : index
    %8 = vector.load %arg5[%c0_5, %c0_6] : memref<128x256xbf16, #tpu.memory_space<vmem>>, vector<128x256xbf16>
    %cst_7 = arith.constant dense<0.000000e+00> : vector<128x256xf32>
    %9 = tpu.matmul %8, %7, %cst_7 {dimension_numbers = #tpu.dot_dimension_numbers<[1], [0], [0], [1], [0, 0, 1, 1], [], []>} : vector<128x256xbf16>, vector<256x256xbf16>, vector<128x256xf32> -> vector<128x256xf32>
    %10 = arith.truncf %9 : vector<128x256xf32> to vector<128x256xbf16>
    %cst_8 = arith.constant 0.000000e+00 : bf16
    %11 = vector.broadcast %cst_8 : bf16 to vector<128x256xbf16>
    %12 = arith.maximumf %10, %11 : vector<128x256xbf16>
    %c0_9 = arith.constant 0 : index
    %c0_10 = arith.constant 0 : index
    %13 = vector.load %arg6[%c0_9, %c0_10] : memref<8x128xbf16, #tpu.memory_space<vmem>>, vector<8x128xbf16>
    %cst_11 = arith.constant dense<0.000000e+00> : vector<8x256xf32>
    %14 = tpu.matmul %13, %12, %cst_11 {dimension_numbers = #tpu.dot_dimension_numbers<[1], [0], [0], [1], [0, 0, 1, 1], [], []>} : vector<8x128xbf16>, vector<128x256xbf16>, vector<8x256xf32> -> vector<8x256xf32>
    %15 = vector.extract_strided_slice %14 {offsets = [0, 0], sizes = [1, 256], strides = [1, 1]} : vector<8x256xf32> to vector<1x256xf32>
    %16 = arith.negf %15 : vector<1x256xf32>
    %17 = math.exp %16 : vector<1x256xf32>
    %cst_12 = arith.constant 1.000000e+00 : f32
    %18 = vector.broadcast %cst_12 : f32 to vector<1x256xf32>
    %19 = arith.addf %18, %17 : vector<1x256xf32>
    %20 = arith.divf %18, %19 : vector<1x256xf32>
    %c0_13 = arith.constant 0 : index
    %c0_14 = arith.constant 0 : index
    %c0_15 = arith.constant 0 : index
    %21 = vector.load %arg7[%c0_13, %c0_14, %c0_15] : memref<1x1x256xf32, #tpu.memory_space<vmem>>, vector<1x1x256xf32>
    %22 = vector.shape_cast %21 : vector<1x1x256xf32> to vector<1x256xf32>
    %23 = vector.shape_cast %20 : vector<1x256xf32> to vector<1x1x256xf32>
    tpu.vector_store %arg7[%c0_13, %c0_14, %c0_15], %23 {strides = array<i32>} : memref<1x1x256xf32, #tpu.memory_space<vmem>>, vector<1x1x256xf32>,
    %c0_i32 = arith.constant 0 : i32
    %24 = arith.cmpi eq, %arg2, %c0_i32 : i32
    %25 = arith.extui %24 : i1 to i32
    %c0_i32_16 = arith.constant 0 : i32
    %26 = arith.cmpi ne, %25, %c0_i32_16 : i32
    scf.if %26 {
      %cst_27 = arith.constant 0.000000e+00 : f32
      %38 = vector.broadcast %cst_27 : f32 to vector<128x1xf32>
      %c0_28 = arith.constant 0 : index
      %c0_29 = arith.constant 0 : index
      %c0_30 = arith.constant 0 : index
      %c0_31 = arith.constant 0 : index
      %39 = vector.load %arg8[%c0_28, %c0_29, %c0_30, %c0_31] : memref<1x1x128x1xf32, #tpu.memory_space<vmem>>, vector<1x1x128x1xf32>
      %40 = vector.shape_cast %39 : vector<1x1x128x1xf32> to vector<128x1xf32>
      %41 = vector.shape_cast %38 : vector<128x1xf32> to vector<1x1x128x1xf32>
      tpu.vector_store %arg8[%c0_28, %c0_29, %c0_30, %c0_31], %41 {strides = array<i32>} : memref<1x1x128x1xf32, #tpu.memory_space<vmem>>, vector<1x1x128x1xf32>,
    } else {
    }
    %c0_17 = arith.constant 0 : index
    %c0_18 = arith.constant 0 : index
    %c0_19 = arith.constant 0 : index
    %c0_20 = arith.constant 0 : index
    %27 = vector.load %arg8[%c0_17, %c0_18, %c0_19, %c0_20] : memref<1x1x128x1xf32, #tpu.memory_space<vmem>>, vector<1x1x128x1xf32>
    %28 = vector.shape_cast %27 : vector<1x1x128x1xf32> to vector<128x1xf32>
    %29 = arith.extf %12 : vector<128x256xbf16> to vector<128x256xf32>
    %cst_21 = arith.constant dense<0.000000e+00> : vector<128xf32>
    %30 = vector.multi_reduction <add>, %29, %cst_21 [1] : vector<128x256xf32> to vector<128xf32>
    %31 = vector.shape_cast %30 : vector<128xf32> to vector<128x1xf32>
    %cst_22 = arith.constant 9.765625E-4 : f32
    %32 = vector.broadcast %cst_22 : f32 to vector<128x1xf32>
    %33 = arith.mulf %31, %32 : vector<128x1xf32>
    %34 = arith.addf %28, %33 : vector<128x1xf32>
    %c0_23 = arith.constant 0 : index
    %c0_24 = arith.constant 0 : index
    %c0_25 = arith.constant 0 : index
    %c0_26 = arith.constant 0 : index
    %35 = vector.load %arg8[%c0_23, %c0_24, %c0_25, %c0_26] : memref<1x1x128x1xf32, #tpu.memory_space<vmem>>, vector<1x1x128x1xf32>
    %36 = vector.shape_cast %35 : vector<1x1x128x1xf32> to vector<128x1xf32>
    %37 = vector.shape_cast %34 : vector<128x1xf32> to vector<1x1x128x1xf32>
    tpu.vector_store %arg8[%c0_23, %c0_24, %c0_25, %c0_26], %37 {strides = array<i32>} : memref<1x1x128x1xf32, #tpu.memory_space<vmem>>, vector<1x1x128x1xf32>,
    return
  }
  func.func @transform_0(%arg0: i32, %arg1: i32, %arg2: i32) -> (i32, i32, i32) {
    %c2_i32 = arith.constant 2 : i32
    %0 = arith.muli %arg1, %c2_i32 : i32
    %1 = arith.addi %0, %arg2 : i32
    %c0_i32 = arith.constant 0 : i32
    %c0_i32_0 = arith.constant 0 : i32
    return %arg0, %c0_i32, %1 : i32, i32, i32
  }
  func.func @transform_1(%arg0: i32, %arg1: i32, %arg2: i32) -> (i32, i32) {
    %c0_i32 = arith.constant 0 : i32
    %c0_i32_0 = arith.constant 0 : i32
    %c0_i32_1 = arith.constant 0 : i32
    return %c0_i32, %c0_i32_0 : i32, i32
  }
  func.func @transform_2(%arg0: i32, %arg1: i32, %arg2: i32) -> (i32, i32) {
    %c0_i32 = arith.constant 0 : i32
    %c0_i32_0 = arith.constant 0 : i32
    %c0_i32_1 = arith.constant 0 : i32
    return %c0_i32, %c0_i32_0 : i32, i32
  }
  func.func @transform_3(%arg0: i32, %arg1: i32, %arg2: i32) -> (i32, i32) {
    %c0_i32 = arith.constant 0 : i32
    %c0_i32_0 = arith.constant 0 : i32
    %c0_i32_1 = arith.constant 0 : i32
    return %c0_i32, %c0_i32_0 : i32, i32
  }
  func.func @transform_4(%arg0: i32, %arg1: i32, %arg2: i32) -> (i32, i32, i32) {
    %c2_i32 = arith.constant 2 : i32
    %0 = arith.muli %arg1, %c2_i32 : i32
    %1 = arith.addi %0, %arg2 : i32
    %c0_i32 = arith.constant 0 : i32
    %c0_i32_0 = arith.constant 0 : i32
    return %arg0, %c0_i32, %1 : i32, i32, i32
  }
  func.func @transform_5(%arg0: i32, %arg1: i32, %arg2: i32) -> (i32, i32, i32, i32) {
    %c0_i32 = arith.constant 0 : i32
    %c0_i32_0 = arith.constant 0 : i32
    %c0_i32_1 = arith.constant 0 : i32
    return %arg0, %arg1, %c0_i32, %c0_i32_0 : i32, i32, i32, i32
  }
}

</mosaic_0001>

<bundles_post_ra>
// kernel: local_domain_classifier.1
= control target key start
LH: loop header
LB: loop body
LE: loop exit
PB: predicated region body
PF: predicated region fallthrough
CT: control target
= control target key end

     0   :  { %s1704_s18 = smov 0   ;;  %s1706_s19 = smov 0   ;;  %s2297_s0 = inlined_call_operand.vmem [shape: f32[2,32,1024], index: 0, kind: input, shape index: {}]   ;;  %s2298_s1 = inlined_call_operand.vmem [shape: bf16[256,32], index: 1, kind: input, shape index: {}]   ;;  %s2299_s2 = inlined_call_operand.vmem [shape: bf16[128,256], index: 2, kind: input, shape index: {}]   ;;  %s2300_s3 = inlined_call_operand.vmem [shape: bf16[8,128], index: 3, kind: input, shape index: {}]   ;;  %s2301_s4 = inlined_call_operand.vmem [shape: f32[2,1,1024], index: 4, kind: output, shape index: {0}]   ;;  %s2302_s5 = inlined_call_operand.vmem [shape: f32[2,2,128,1], index: 5, kind: output, shape index: {1}]  }
   0x1   :  { %s1708_s20 = smov 0   ;;  %s1710_s21 = smov 0  }
   0x2   :  { %s1712_s22 = smov 0   ;;  %s1714_s23 = smov 0  }
   0x3   :  { %s1716_s24 = smov 0   ;;  %s1718_s25 = smov 0  }
   0x4   :  { %s1720_s26 = smov 0  }
   0x5 LB: > { %s28_s27 = sadd.s32 1, %s1657_s23  ;;  %s31_s28 = sadd.s32 1, %s1661_s24  ;;  %s1669_s26 = sphi %s1720_s26, %s16_s26   ;;  %s1665_s25 = sphi %s1718_s25, %s2313_s25   ;;  %s1661_s24 = sphi %s1716_s24, %s2312_s24   ;;  %s1657_s23 = sphi %s1714_s23, %s2311_s23   ;;  %s1653_s22 = sphi %s1712_s22, %s2310_s22   ;;  %s1649_s21 = sphi %s1710_s21, %s2309_s21   ;;  %s1645_s20 = sphi %s1708_s20, %s2308_s20   ;;  %s1641_s19 = sphi %s1706_s19, %s2307_s19   ;;  %s1637_s18 = sphi %s1704_s18, %s2306_s18  }
   0x6   : > { %p29_p0 = scmp.ge.s32.totalorder %s28_s27, 2  ;;  %s1404_s29 = sshll.u32 %s1661_s24, 1 }
   0x7   : > { %s35_s30 = sadd.s32 1, %s1665_s25  ;;  %p55_p1 = scmp.ne.s32.totalorder %s1641_s19, %s1637_s18 }
   0x8   : > { %s2315_s27 = smov (%p29_p0, %s28_s27), 0  ;;  %s2317_s28 = smov (!%p29_p0, %s31_s28), %s1661_s24 }
   0x9   : > { %p33_p2 = scmp.ge.s32.totalorder %s2317_s28, 2  ;;  %p56_p3 = scmp.eq.s32.totalorder %s1669_s26, 0 }
   0xa   : > { %s40_s6 = sadd.s32 %s1657_s23, %s1404_s29  ;;  %s48_s12 = sadd.s32 1, %s1641_s19 }
   0xb   : > { %s2319_s28 = smov (%p33_p2, %s2317_s28), 0  ;;  %s2321_s30 = smov (!%p33_p2, %s35_s30), %s1665_s25 }
   0xc   : > { %2304 = sst [smem:[#allocation3_spill]] %s2319_s28  ;;  %s1405_s7 = sshll.u32 %s2319_s28, 1 }
   0xd   : > { %p57_p4 = por %p56_p3, %p55_p1  ;;  %p37_p5 = scmp.ge.s32.totalorder %s2321_s30, 2 }
   0xe   : > { %s42_s8 = sadd.s32 %s1405_s7, %s2315_s27  ;;  %p1409_p7 = scmp.ge.s32.totalorder %s1669_s26, 8 }
   0xf   : > { %s44_s9 = ssub.s32 %s40_s6, %s42_s8  ;;  %s2323_s30 = smov (%p37_p5, %s2321_s30), 0 }
  0x10   : > { %s43_s10 = ssub.s32 %s1665_s25, %s2323_s30  ;;  %213 = sbr.rel (%p1409_p7) target bundleno = 32 (0x20), region = 28 }
  0x11   : > { %s45_s11 = sor.u32 %s44_s9, %s43_s10 }
  0x12   : > { %p46_p6 = scmp.eq.s32.totalorder %s45_s11, 0 }
  0x14   : > { %s1771_s13 = scalar_select %p46_p6, %s1641_s19, %s48_s12  }
  0x15   : > { %216 = sbr.rel (!%p57_p4) target bundleno = 32 (0x20), region = 32  ;;  %s218_s14 = sand.u32 (%p57_p4), 1, %s1641_s19  }
  0x16   : > { %s1412_s15 = sshll.u32 (%p57_p4), %s40_s6, 1  ;;  %s1410_s16 = sshll.u32 (%p57_p4), %s218_s14, 6 }
  0x17   : > { %s1413_s17 = sshll.u32 (%p57_p4), %s1665_s25, 5  ;;  %s220_s10 = scalar_lea.vmem (%p57_p4), [#allocation2], %s1410_s16 }
  0x18   : > { %s225_s29 = sadd.s32 (%p57_p4), %s1413_s17, %s1412_s15 }
  0x19   : > { %s1414_s7 = sshll.u32 (%p57_p4), %s225_s29, 3 }
  0x1a   : > { %s227_s9 = scalar_lea.vmem %s2297_s0, %s1414_s7 }
  0x1b   : > { %v240_v0 = vld [vmem:[%s227_s9] sm:$0xff]  ;;  %v242_v1 = vld [vmem:[%s227_s9 + $0x8] sm:$0xff] }
  0x1c   : > { %v244_v2 = vld [vmem:[%s227_s9 + $0x40] sm:$0xff]  ;;  %241 = vst [vmem:[%s220_s10] sm:$0xff] %v240_v0  ;;  %243 = vst [vmem:[%s220_s10 + $0x8] sm:$0xff] %v242_v1  ;;  %v246_v3 = vld [vmem:[%s227_s9 + $0x48] sm:$0xff] }
  0x1d   : > { %245 = vst [vmem:[%s220_s10 + $0x10] sm:$0xff] %v244_v2  ;;  %v248_v4 = vld [vmem:[%s227_s9 + $0x80] sm:$0xff]  ;;  %v250_v5 = vld [vmem:[%s227_s9 + $0x88] sm:$0xff]  ;;  %247 = vst [vmem:[%s220_s10 + $0x18] sm:$0xff] %v246_v3 }
  0x1e   : > { %249 = vst [vmem:[%s220_s10 + $0x20] sm:$0xff] %v248_v4  ;;  %251 = vst [vmem:[%s220_s10 + $0x28] sm:$0xff] %v250_v5  ;;  %v252_v6 = vld [vmem:[%s227_s9 + $0xc0] sm:$0xff]  ;;  %v254_v7 = vld [vmem:[%s227_s9 + $0xc8] sm:$0xff] }
  0x1f   : > { %253 = vst [vmem:[%s220_s10 + $0x30] sm:$0xff] %v252_v6  ;;  %255 = vst [vmem:[%s220_s10 + $0x38] sm:$0xff] %v254_v7 }
  0x20 PF: > { %p1415_p8 = scmp.ge.s32.totalorder %s1669_s26, 1  ;;  %p260_p9 = scmp.lt.s32.totalorder %s1669_s26, 9 }
  0x22   : > { %p261_p10 = pnand %p1415_p8, %p260_p9 }
  0x23   : > { %s267_s28 = sand.u32 (!%p261_p10), 1, %s1637_s18   ;;  %p314_p11 = scmp.lt.s32.totalorder (!%p261_p10), %s1653_s22, 1 }
  0x24   : > { %264 = sbr.rel (%p261_p10) target bundleno = 1116 (0x45c), region = 55  ;;  %s1416_s6 = sshll.u32 (!%p261_p10), %s267_s28, 6 }
  0x25   : > { %s269_s11 = scalar_lea.vmem (!%p261_p10), [#allocation2], %s1416_s6  ;;  %p326_p12 = scmp.lt.s32.totalorder (!%p261_p10), %s1649_s21, 1 }
  0x26   : > { %s1417_s16 = sshll.u32 (!%p261_p10), %s1649_s21, 1  ;;  %p1473_p0 = scmp.ne.s32.totalorder (!%p261_p10), %s1645_s20, 0 }
  0x27   : > { %s312_s17 = sadd.s32 (!%p261_p10), %s1645_s20, %s1417_s16 }
  0x28   : > { %s1418_s29 = sshll.u32 (!%p261_p10), %s312_s17, 1 }
  0x29   : > { %v1671_v8 = vmov 0   ;;  %v339_v9 = vld [vmem:[%s269_s11 + $0x28] sm:$0xff]  ;;  %v341_v10 = vld [vmem:[%s269_s11 + $0x38] sm:$0xff]  ;;  %v338_v11 = vld [vmem:[%s269_s11 + $0x20] sm:$0xff]  ;;  %vm458_vm0 = vcmask 261120   ;;  %s2325_s22 = smov (!%p314_p11, %s1653_s22), 1 }
  0x2a   : > { %539 = vmatprep.mubr.bf16.mxu0 %v1671_v8  ;;  %v345_v12 = vpack.c.bf16 %v341_v10, %v339_v9  ;;  %v340_v13 = vld [vmem:[%s269_s11 + $0x30] sm:$0xff]  ;;  %v335_v14 = vld [vmem:[%s269_s11 + $0x8] sm:$0xff]  ;;  %v337_v15 = vld [vmem:[%s269_s11 + $0x18] sm:$0xff]  ;;  %s1421_s10 = sshll.u32 %s2325_s22, 5  ;;  %p316_p13 = scmp.lt.s32.totalorder %s1418_s29, 7 }
  0x2b   : > { %v344_v16 = vpack.c.bf16 %v340_v13, %v338_v11  ;;  %v343_v17 = vpack.c.bf16 %v337_v15, %v335_v14  ;;  %v334_v18 = vld [vmem:[%s269_s11] sm:$0xff]  ;;  %v336_v19 = vld [vmem:[%s269_s11 + $0x10] sm:$0xff]  ;;  %v1552_v22 = vld [vmem:[%s2298_s1 + $0x8] sm:$0xff]   ;;  %s327_s28 = scalar_select %p326_p12, %s1649_s21, 1 }
  0x2c   : > { %519 = vmatprep.subr.bf16.mxu0 %v345_v12  ;;  %v342_v20 = vpack.c.bf16 %v336_v19, %v334_v18  ;;  %v1551_v21 = vld [vmem:[%s2298_s1] sm:$0xff]   ;;  %v1553_v23 = vld [vmem:[%s2298_s1 + $0x10] sm:$0xff]   ;;  %v1554_v24 = vld [vmem:[%s2298_s1 + $0x18] sm:$0xff]   ;;  %s2327_s29 = smov (!%p316_p13, %s1418_s29), 7  ;;  %s1419_s7 = sshll.u32 %s2325_s22, 3 }
  0x2d   : > { %520 = vmatpush1.bf16.msra.mxu0 %v344_v16  ;;  %v1555_v25 = vld [vmem:[%s2298_s1 + $0x20] sm:$0xff]   ;;  %v1556_v26 = vld [vmem:[%s2298_s1 + $0x28] sm:$0xff]   ;;  %v1557_v27 = vld [vmem:[%s2298_s1 + $0x30] sm:$0xff]   ;;  %s1420_s6 = sshll.u32 %s327_s28, 4  ;;  %s319_s8 = sadd.s32 %s1419_s7, %s2327_s29 }
  0x2e   : > { %521 = vmatprep.subr.bf16.mxu0 %v343_v17  ;;  %v1558_v28 = vld [vmem:[%s2298_s1 + $0x38] sm:$0xff]   ;;  %v1559_v29 = vld [vmem:[%s2298_s1 + $0x40] sm:$0xff]   ;;  %v1560_v30 = vld [vmem:[%s2298_s1 + $0x48] sm:$0xff]   ;;  %s330_s11 = sadd.s32 %s1421_s10, %s1420_s6  ;;  %s320_s10 = scalar_lea.vmem %s2301_s4, %s319_s8 }
  0x2f   : > { %v1561_v31 = vld [vmem:[%s2298_s1 + $0x50] sm:$0xff]   ;;  %v1562_v32 = vld [vmem:[%s2298_s1 + $0x58] sm:$0xff]   ;;  %v1563_v33 = vld [vmem:[%s2298_s1 + $0x60] sm:$0xff]   ;;  %s1422_s18 = sshll.u32 %s330_s11, 3 }
  0x30   : > { %v1564_v34 = vld [vmem:[%s2298_s1 + $0x68] sm:$0xff]   ;;  %v1565_v35 = vld [vmem:[%s2298_s1 + $0x70] sm:$0xff]   ;;  %v1566_v36 = vld [vmem:[%s2298_s1 + $0x78] sm:$0xff]   ;;  %s2149_s15 = scalar_lea.vmem %s2302_s5, %s1422_s18 }
  0x31   : > { %522 = vmatpush1.bf16.msra.mxu0 %v342_v20  ;;  %v1569_v58 = vld [vmem:[%s2299_s2 + $0x4] ss:$8 sps:$4 sm:$0xff]  }
  0x32   : > { %892 = vmatprep.mubr.bf16.mxu1 %v1569_v58 }
  0x34   : > { %1439 = vmatmul.mubr.msk.bf16.vlgmr.msra.gmra.mxu0 %vm458_vm0, %v1551_v21 }
  0x35   : > { %549 = vmatprep.mubr.bf16.mxu0 %v1671_v8 }
  0x3c   : > { %1440 = vmatmul.mubr.msk.bf16.gmra.mxu0 %vm458_vm0, %v1552_v22 }
  0x3d   : > { %559 = vmatprep.mubr.bf16.mxu0 %v1671_v8 }
  0x44   : > { %1441 = vmatmul.mubr.msk.bf16.gmra.mxu0 %vm458_vm0, %v1553_v23 }
  0x45   : > { %569 = vmatprep.mubr.bf16.mxu0 %v1671_v8 }
  0x4c   : > { %1442 = vmatmul.mubr.msk.bf16.gmra.mxu0 %vm458_vm0, %v1554_v24 }
  0x4d   : > { %579 = vmatprep.mubr.bf16.mxu0 %v1671_v8 }
  0x54   : > { %1443 = vmatmul.mubr.msk.bf16.gmra.mxu0 %vm458_vm0, %v1555_v25 }
  0x55   : > { %589 = vmatprep.mubr.bf16.mxu0 %v1671_v8 }
  0x5c   : > { %1444 = vmatmul.mubr.msk.bf16.gmra.mxu0 %vm458_vm0, %v1556_v26 }
  0x5d   : > { %599 = vmatprep.mubr.bf16.mxu0 %v1671_v8 }
  0x64   : > { %1445 = vmatmul.mubr.msk.bf16.gmra.mxu0 %vm458_vm0, %v1557_v27 }
  0x65   : > { %609 = vmatprep.mubr.bf16.mxu0 %v1671_v8 }
  0x6c   : > { %1446 = vmatmul.mubr.msk.bf16.gmra.mxu0 %vm458_vm0, %v1558_v28 }
  0x6d   : > { %619 = vmatprep.mubr.bf16.mxu0 %v1671_v8 }
  0x74   : > { %1447 = vmatmul.mubr.msk.bf16.gmra.mxu0 %vm458_vm0, %v1559_v29 }
  0x75   : > { %629 = vmatprep.mubr.bf16.mxu0 %v1671_v8 }
  0x7c   : > { %1448 = vmatmul.mubr.msk.bf16.gmra.mxu0 %vm458_vm0, %v1560_v30 }
  0x7d   : > { %639 = vmatprep.mubr.bf16.mxu0 %v1671_v8 }
  0x84   : > { %1449 = vmatmul.mubr.msk.bf16.gmra.mxu0 %vm458_vm0, %v1561_v31 }
  0x85   : > { %649 = vmatprep.mubr.bf16.mxu0 %v1671_v8 }
  0x8c   : > { %1450 = vmatmul.mubr.msk.bf16.gmra.mxu0 %vm458_vm0, %v1562_v32 }
  0x8d   : > { %659 = vmatprep.mubr.bf16.mxu0 %v1671_v8 }
  0x94   : > { %1451 = vmatmul.mubr.msk.bf16.gmra.mxu0 %vm458_vm0, %v1563_v33 }
  0x95   : > { %669 = vmatprep.mubr.bf16.mxu0 %v1671_v8 }
  0x9c   : > { %1452 = vmatmul.mubr.msk.bf16.gmra.mxu0 %vm458_vm0, %v1564_v34 }
  0x9d   : > { %679 = vmatprep.mubr.bf16.mxu0 %v1671_v8 }
  0xa4   : > { %1453 = vmatmul.mubr.msk.bf16.gmra.mxu0 %vm458_vm0, %v1565_v35 }
  0xa5   : > { %689 = vmatprep.mubr.bf16.mxu0 %v1671_v8 }
  0xac   : > { %1454 = vmatmul.mubr.msk.bf16.gmra.mxu0 %vm458_vm0, %v1566_v36 }
  0xf4   : > { %v1862_v37 = vpop.f32.mrf.mxu0 }
  0xf6   : > { %v1864_v38 = vpop.f32.mrf.mxu0 }
  0xf8   : > { %v1866_v39 = vpop.f32.mrf.mxu0 }
  0xf9   : > { %v700_v40 = vpack.c.bf16 %v1866_v39, %v1862_v37 }
  0xfa   : > { %v1870_v41 = vpop.f32.mrf.mxu0 }
  0xfb   : > { %v701_v42 = vpack.c.bf16 %v1870_v41, %v1864_v38 }
  0xfc   : > { %v1874_v43 = vpop.f32.mrf.mxu0 }
  0xfe   : > { %v1876_v44 = vpop.f32.mrf.mxu0 }
 0x100   : > { %v1878_v45 = vpop.f32.mrf.mxu0 }
 0x101   : > { %v702_v46 = vpack.c.bf16 %v1878_v45, %v1874_v43 }
 0x102   : > { %v1882_v47 = vpop.f32.mrf.mxu0 }
 0x103   : > { %v703_v48 = vpack.c.bf16 %v1882_v47, %v1876_v44  ;;  %v732_v44 = vmax.bf16 %v1671_v8, %v700_v40 }
 0x104   : > { %v1886_v49 = vpop.f32.mrf.mxu0 }
 0x106   : > { %v1888_v50 = vpop.f32.mrf.mxu0 }
 0x108   : > { %v1890_v51 = vpop.f32.mrf.mxu0 }
 0x10a   : > { %v1892_v52 = vpop.f32.mrf.mxu0 }
 0x10c   : > { %v1894_v53 = vpop.f32.mrf.mxu0 }
 0x10e   : > { %v573_v54 = vpop.f32.mrf.mxu0 }
 0x110   : > { %v1896_v55 = vpop.f32.mrf.mxu0 }
 0x111   : > { %v706_v58 = vpack.c.bf16 %v1896_v55, %v1894_v53 }
 0x112   : > { %v577_v56 = vpop.f32.mrf.mxu0 }
 0x113   : > { %v707_v33 = vpack.c.bf16 %v577_v56, %v573_v54  ;;  %v738_v53 = vmax.bf16 %v1671_v8, %v706_v58 }
 0x114   : > { %v581_v57 = vpop.f32.mrf.mxu0 }
 0x115   : > { %v739_v54 = vmax.bf16 %v1671_v8, %v707_v33 }
 0x116   : > { %v583_v59 = vpop.f32.mrf.mxu0 }
 0x118   : > { %v585_v60 = vpop.f32.mrf.mxu0 }
 0x119   : > { %v708_v30 = vpack.c.bf16 %v585_v60, %v581_v57  ;;  %v705_v60 = vpack.c.bf16 %v1892_v52, %v1888_v50 }
 0x11a   : > { %v587_v61 = vpop.f32.mrf.mxu0 }
 0x11b   : > { %v709_v26 = vpack.c.bf16 %v587_v61, %v583_v59  ;;  %v740_v59 = vmax.bf16 %v1671_v8, %v708_v30 }
 0x11c   : > { %v591_v62 = vpop.f32.mrf.mxu0 }
 0x11d   : > { %v741_v34 = vmax.bf16 %v1671_v8, %v709_v26 }
 0x11e   : > { %v593_v63 = vpop.f32.mrf.mxu0 }
 0x120   : > { %v595_v0 = vpop.f32.mrf.mxu0 }
 0x121   : > { %v710_v23 = vpack.c.bf16 %v595_v0, %v591_v62  ;;  %v704_v62 = vpack.c.bf16 %v1890_v51, %v1886_v49  ;;  %v734_v49 = vmax.bf16 %v1671_v8, %v702_v46 }
 0x122   : > { %v597_v1 = vpop.f32.mrf.mxu0 }
 0x123   : > { %v711_v19 = vpack.c.bf16 %v597_v1, %v593_v63  ;;  %v742_v31 = vmax.bf16 %v1671_v8, %v710_v23  ;;  %v737_v63 = vmax.bf16 %v1671_v8, %v705_v60  ;;  %v736_v50 = vmax.bf16 %v1671_v8, %v704_v62 }
 0x124   : > { %v601_v2 = vpop.f32.mrf.mxu0  ;;  %v735_v1 = vmax.bf16 %v1671_v8, %v703_v48 }
 0x125   : > { %v743_v27 = vmax.bf16 %v1671_v8, %v711_v19 }
 0x126   : > { %v603_v3 = vpop.f32.mrf.mxu0 }
 0x128   : > { %v605_v4 = vpop.f32.mrf.mxu0 }
 0x129   : > { %v712_v16 = vpack.c.bf16 %v605_v4, %v601_v2 }
 0x12a   : > { %v607_v5 = vpop.f32.mrf.mxu0 }
 0x12b   : > { %v713_v12 = vpack.c.bf16 %v607_v5, %v603_v3  ;;  %v744_v24 = vmax.bf16 %v1671_v8, %v712_v16  ;;  %v733_v3 = vmax.bf16 %v1671_v8, %v701_v42 }
 0x12c   : > { %v611_v6 = vpop.f32.mrf.mxu0 }
 0x12d   : > { %v745_v20 = vmax.bf16 %v1671_v8, %v713_v12 }
 0x12e   : > { %v613_v7 = vpop.f32.mrf.mxu0 }
 0x130   : > { %v615_v9 = vpop.f32.mrf.mxu0 }
 0x131   : > { %v714_v10 = vpack.c.bf16 %v615_v9, %v611_v6 }
 0x132   : > { %v617_v11 = vpop.f32.mrf.mxu0 }
 0x133   : > { %v715_v13 = vpack.c.bf16 %v617_v11, %v613_v7  ;;  %v746_v18 = vmax.bf16 %v1671_v8, %v714_v10 }
 0x134   : > { %v1901_v14 = vpop.f32.mrf.mxu0 }
 0x135   : > { %v747_v15 = vmax.bf16 %v1671_v8, %v715_v13 }
 0x136   : > { %v1904_v17 = vpop.f32.mrf.mxu0 }
 0x137   : > { %860 = vmatprep.subr.bf16.mxu1 %v747_v15 }
 0x138   : > { %v1908_v21 = vpop.f32.mrf.mxu0  ;;  %861 = vmatpush1.bf16.msra.mxu1 %v746_v18 }
 0x139   : > { %v716_v22 = vpack.c.bf16 %v1908_v21, %v1901_v14  ;;  %862 = vmatprep.subr.bf16.mxu1 %v745_v20  ;;  %v1573_v14 = vld [vmem:[%s2299_s2 + $0x24] ss:$8 sps:$4 sm:$0xff]   ;;  %v1575_v21 = vld [vmem:[%s2299_s2 + $0x20] ss:$8 sps:$4 sm:$0xff]  }
 0x13a   : > { %v1913_v25 = vpop.f32.mrf.mxu0 }
 0x13b   : > { %v717_v28 = vpack.c.bf16 %v1913_v25, %v1904_v17  ;;  %v1572_v17 = vld [vmem:[%s2299_s2 + $0x10] ss:$8 sps:$4 sm:$0xff]  }
 0x13c   : > { %v1918_v29 = vpop.f32.mrf.mxu0  ;;  %863 = vmatpush1.bf16.msra.mxu1 %v744_v24  ;;  %v1578_v25 = vld [vmem:[%s2299_s2 + $0x30] ss:$8 sps:$4 sm:$0xff]  }
 0x13d   : > { %864 = vmatprep.subr.bf16.mxu1 %v743_v27 }
 0x13e   : > { %v1921_v32 = vpop.f32.mrf.mxu0 }
 0x140   : > { %v1924_v35 = vpop.f32.mrf.mxu0  ;;  %865 = vmatpush1.bf16.msra.mxu1 %v742_v31 }
 0x141   : > { %v718_v36 = vpack.c.bf16 %v1924_v35, %v1918_v29  ;;  %866 = vmatprep.subr.bf16.mxu1 %v741_v34  ;;  %v1570_v29 = vld [vmem:[%s2299_s2 + $0x14] ss:$8 sps:$4 sm:$0xff]   ;;  %v1581_v35 = vld [vmem:[%s2299_s2 + $0x40] ss:$8 sps:$4 sm:$0xff]  }
 0x142   : > { %v1931_v57 = vpop.f32.mrf.mxu0 }
 0x143   : > { %v719_v56 = vpack.c.bf16 %v1931_v57, %v1921_v32  ;;  %v748_v32 = vmax.bf16 %v1671_v8, %v716_v22  ;;  %v1567_v57 = vld [vmem:[%s2299_s2] ss:$8 sps:$4 sm:$0xff]   ;;  %v1576_v22 = vld [vmem:[%s2299_s2 + $0x34] ss:$8 sps:$4 sm:$0xff]  }
 0x144   : > { %v1938_v61 = vpop.f32.mrf.mxu0  ;;  %867 = vmatpush1.bf16.msra.mxu1 %v740_v59 }
 0x145   : > { %868 = vmatprep.subr.bf16.mxu1 %v739_v54 }
 0x146   : > { %v1943_v55 = vpop.f32.mrf.mxu0 }
 0x148   : > { %v1946_v0 = vpop.f32.mrf.mxu0  ;;  %869 = vmatpush1.bf16.msra.mxu1 %v738_v53 }
 0x149   : > { %870 = vmatprep.subr.bf16.mxu1 %v737_v63  ;;  %v720_v53 = vpack.c.bf16 %v1946_v0, %v1938_v61  ;;  %v750_v61 = vmax.bf16 %v1671_v8, %v718_v36  ;;  %v749_v0 = vmax.bf16 %v1671_v8, %v717_v28  ;;  %v1579_v28 = vld [vmem:[%s2299_s2 + $0x44] ss:$8 sps:$4 sm:$0xff]   ;;  %v1582_v36 = vld [vmem:[%s2299_s2 + $0x54] ss:$8 sps:$4 sm:$0xff]  }
 0x14a   : > { %v647_v52 = vpop.f32.mrf.mxu0 }
 0x14b   : > { %v721_v54 = vpack.c.bf16 %v647_v52, %v1943_v55  ;;  %v751_v55 = vmax.bf16 %v1671_v8, %v719_v56  ;;  %v1584_v56 = vld [vmem:[%s2299_s2 + $0x50] ss:$8 sps:$4 sm:$0xff]   ;;  %v1585_v52 = vld [vmem:[%s2299_s2 + $0x64] ss:$8 sps:$4 sm:$0xff]  }
 0x14c   : > { %v651_v2 = vpop.f32.mrf.mxu0  ;;  %871 = vmatpush1.bf16.msra.mxu1 %v736_v50 }
 0x14d   : > { %872 = vmatprep.subr.bf16.mxu1 %v735_v1  ;;  %v753_v50 = vmax.bf16 %v1671_v8, %v721_v54  ;;  %v752_v1 = vmax.bf16 %v1671_v8, %v720_v53 }
 0x14e   : > { %v653_v51 = vpop.f32.mrf.mxu0 }
 0x150   : > { %v655_v4 = vpop.f32.mrf.mxu0  ;;  %873 = vmatpush1.bf16.msra.mxu1 %v734_v49  ;;  %v1588_v49 = vld [vmem:[%s2299_s2 + $0x74] ss:$8 sps:$4 sm:$0xff]  }
 0x151   : > { %874 = vmatprep.subr.bf16.mxu1 %v733_v3  ;;  %v722_v59 = vpack.c.bf16 %v655_v4, %v651_v2  ;;  %v1587_v2 = vld [vmem:[%s2299_s2 + $0x60] ss:$8 sps:$4 sm:$0xff]  }
 0x152   : > { %v657_v47 = vpop.f32.mrf.mxu0 }
 0x153   : > { %v723_v34 = vpack.c.bf16 %v657_v47, %v653_v51  ;;  %v754_v63 = vmax.bf16 %v1671_v8, %v722_v59  ;;  %v1590_v51 = vld [vmem:[%s2299_s2 + $0x70] ss:$8 sps:$4 sm:$0xff]  }
 0x154   : > { %v661_v48 = vpop.f32.mrf.mxu0  ;;  %875 = vmatpush1.bf16.msra.mxu1 %v732_v44 }
 0x155   : > { %v755_v62 = vmax.bf16 %v1671_v8, %v723_v34 }
 0x156   : > { %v663_v43 = vpop.f32.mrf.mxu0 }
 0x158   : > { %v665_v45 = vpop.f32.mrf.mxu0 }
 0x159   : > { %v724_v31 = vpack.c.bf16 %v665_v45, %v661_v48 }
 0x15a   : > { %v667_v46 = vpop.f32.mrf.mxu0 }
 0x15b   : > { %v725_v27 = vpack.c.bf16 %v667_v46, %v663_v43  ;;  %v756_v60 = vmax.bf16 %v1671_v8, %v724_v31 }
 0x15c   : > { %v671_v5 = vpop.f32.mrf.mxu0 }
 0x15d   : > { %v757_v58 = vmax.bf16 %v1671_v8, %v725_v27 }
 0x15e   : > { %v673_v6 = vpop.f32.mrf.mxu0 }
 0x160   : > { %v675_v7 = vpop.f32.mrf.mxu0 }
 0x161   : > { %v726_v24 = vpack.c.bf16 %v675_v7, %v671_v5 }
 0x162   : > { %v677_v38 = vpop.f32.mrf.mxu0 }
 0x163   : > { %v727_v20 = vpack.c.bf16 %v677_v38, %v673_v6  ;;  %v758_v33 = vmax.bf16 %v1671_v8, %v726_v24 }
 0x164   : > { %v681_v41 = vpop.f32.mrf.mxu0 }
 0x165   : > { %v759_v30 = vmax.bf16 %v1671_v8, %v727_v20 }
 0x166   : > { %v683_v42 = vpop.f32.mrf.mxu0 }
 0x168   : > { %v685_v9 = vpop.f32.mrf.mxu0 }
 0x169   : > { %v728_v18 = vpack.c.bf16 %v685_v9, %v681_v41 }
 0x16a   : > { %v687_v10 = vpop.f32.mrf.mxu0 }
 0x16b   : > { %v729_v40 = vpack.c.bf16 %v687_v10, %v683_v42  ;;  %v760_v26 = vmax.bf16 %v1671_v8, %v728_v18 }
 0x16c   : > { %v691_v11 = vpop.f32.mrf.mxu0 }
 0x16d   : > { %v761_v23 = vmax.bf16 %v1671_v8, %v729_v40 }
 0x16e   : > { %v693_v12 = vpop.f32.mrf.mxu0 }
 0x170   : > { %v695_v13 = vpop.f32.mrf.mxu0 }
 0x171   : > { %v730_v37 = vpack.c.bf16 %v695_v13, %v691_v11 }
 0x172   : > { %v697_v39 = vpop.f32.mrf.mxu0 }
 0x173   : > { %v731_v15 = vpack.c.bf16 %v697_v39, %v693_v12  ;;  %v762_v19 = vmax.bf16 %v1671_v8, %v730_v37 }
 0x175   : > { %v763_v16 = vmax.bf16 %v1671_v8, %v731_v15 }
 0x177   : > { %876 = vmatprep.subr.bf16.mxu1 %v763_v16 }
 0x178   : > { %877 = vmatpush2.bf16.msra.mxu1 %v762_v19 }
 0x179   : > { %878 = vmatprep.subr.bf16.mxu1 %v761_v23 }
 0x17c   : > { %879 = vmatpush2.bf16.msra.mxu1 %v760_v26 }
 0x17d   : > { %880 = vmatprep.subr.bf16.mxu1 %v759_v30 }
 0x180   : > { %881 = vmatpush2.bf16.msra.mxu1 %v758_v33 }
 0x181   : > { %882 = vmatprep.subr.bf16.mxu1 %v757_v58 }
 0x184   : > { %883 = vmatpush2.bf16.msra.mxu1 %v756_v60 }
 0x185   : > { %884 = vmatprep.subr.bf16.mxu1 %v755_v62 }
 0x188   : > { %885 = vmatpush2.bf16.msra.mxu1 %v754_v63 }
 0x189   : > { %886 = vmatprep.subr.bf16.mxu1 %v753_v50 }
 0x18c   : > { %887 = vmatpush2.bf16.msra.mxu1 %v752_v1 }
 0x18d   : > { %888 = vmatprep.subr.bf16.mxu1 %v751_v55 }
 0x190   : > { %889 = vmatpush2.bf16.msra.mxu1 %v750_v61 }
 0x191   : > { %890 = vmatprep.subr.bf16.mxu1 %v749_v0 }
 0x194   : > { %891 = vmatpush2.bf16.msra.mxu1 %v748_v32 }
 0x197   : > { %893 = vmatmul.mubr.bf16.vlgmr.msra.gmra.mxu1 %v1567_v57 }
 0x198   : > { %902 = vmatprep.mubr.bf16.mxu1 %v1570_v29 }
 0x19f   : > { %903 = vmatmul.mubr.bf16.gmra.mxu1 %v1572_v17 }
 0x1a0   : > { %912 = vmatprep.mubr.bf16.mxu1 %v1573_v14 }
 0x1a7   : > { %913 = vmatmul.mubr.bf16.gmra.mxu1 %v1575_v21 }
 0x1a8   : > { %922 = vmatprep.mubr.bf16.mxu1 %v1576_v22 }
 0x1af   : > { %923 = vmatmul.mubr.bf16.gmra.mxu1 %v1578_v25 }
 0x1b0   : > { %932 = vmatprep.mubr.bf16.mxu1 %v1579_v28 }
 0x1b7   : > { %933 = vmatmul.mubr.bf16.gmra.mxu1 %v1581_v35 }
 0x1b8   : > { %942 = vmatprep.mubr.bf16.mxu1 %v1582_v36 }
 0x1bf   : > { %943 = vmatmul.mubr.bf16.gmra.mxu1 %v1584_v56 }
 0x1c0   : > { %952 = vmatprep.mubr.bf16.mxu1 %v1585_v52 }
 0x1c7   : > { %953 = vmatmul.mubr.bf16.gmra.mxu1 %v1587_v2 }
 0x1c8   : > { %962 = vmatprep.mubr.bf16.mxu1 %v1588_v49 }
 0x1cf   : > { %963 = vmatmul.mubr.bf16.gmra.mxu1 %v1590_v51 }
 0x1d0   : > { %1038 = vmatprep.mubr.bf16.mxu1 %v1671_v8 }
 0x257   : > { %v2042_v3 = vpop.f32.mrf.mxu1 }
 0x259   : > { %v2044_v4 = vpop.f32.mrf.mxu1 }
 0x25b   : > { %v2046_v44 = vpop.f32.mrf.mxu1 }
 0x25c   : > { %v973_v47 = vpack.c.bf16 %v2046_v44, %v2042_v3 }
 0x25d   : > { %v2050_v48 = vpop.f32.mrf.mxu1 }
 0x25e   : > { %v974_v43 = vpack.c.bf16 %v2050_v48, %v2044_v4 }
 0x25f   : > { %v2054_v45 = vpop.f32.mrf.mxu1 }
 0x260   : > { %v2125_v51 = vmax.bf16 %v1671_v8, %v974_v43 }
 0x261   : > { %v2056_v46 = vpop.f32.mrf.mxu1 }
 0x263   : > { %v2058_v5 = vpop.f32.mrf.mxu1 }
 0x264   : > { %v975_v6 = vpack.c.bf16 %v2058_v5, %v2054_v45  ;;  %v1005_v45 = vld [vmem:[%s2300_s3] sm:$0xf] }
 0x265   : > { %v910_v7 = vpop.f32.mrf.mxu1 }
 0x266   : > { %v976_v38 = vpack.c.bf16 %v910_v7, %v2056_v46  ;;  %v2119_v49 = vmax.bf16 %v1671_v8, %v975_v6  ;;  %v2133_v46 = vmax.bf16 %v1671_v8, %v973_v47 }
 0x267   : > { %v914_v41 = vpop.f32.mrf.mxu1 }
 0x268   : > { %v2111_v2 = vmax.bf16 %v1671_v8, %v976_v38  ;;  %v1672_v38 = vmov 1966171168  }
 0x269   : > { %v916_v42 = vpop.f32.mrf.mxu1 }
 0x26b   : > { %v918_v9 = vpop.f32.mrf.mxu1 }
 0x26c   : > { %v977_v35 = vpack.c.bf16 %v918_v9, %v914_v41  ;;  %v1063_v41 = vunpack.c.l.s4 %v1672_v38 }
 0x26d   : > { %v920_v10 = vpop.f32.mrf.mxu1 }
 0x26e   : > { %v978_v25 = vpack.c.bf16 %v920_v10, %v916_v42  ;;  %v2108_v52 = vmax.bf16 %v1671_v8, %v977_v35  ;;  %v1065_v42 = vlaneseq  ;;  %v1064_v9 = vunpack.c.0.s8 %v1063_v41 }
 0x26f   : > { %v924_v11 = vpop.f32.mrf.mxu1 }
 0x270   : > { %v2103_v56 = vmax.bf16 %v1671_v8, %v978_v25  ;;  %v1066_v10 = vshrl.u32 %v1065_v42, 7  ;;  %vm1079_vm1 = vcmp.lt.s32.totalorder %v1065_v42, 256 }
 0x271   : > { %v926_v12 = vpop.f32.mrf.mxu1 }
 0x273   : > { %v928_v13 = vpop.f32.mrf.mxu1 }
 0x274   : > { %v979_v21 = vpack.c.bf16 %v928_v13, %v924_v11 }
 0x275   : > { %v930_v37 = vpop.f32.mrf.mxu1 }
 0x276   : > { %v980_v17 = vpack.c.bf16 %v930_v37, %v926_v12  ;;  %v2100_v36 = vmax.bf16 %v1671_v8, %v979_v21  ;;  %v1067_v12 = vsub.s32 %v1064_v9, %v1066_v10 }
 0x277   : > { %v934_v39 = vpop.f32.mrf.mxu1 }
 0x278   : > { %v2095_v28 = vmax.bf16 %v1671_v8, %v980_v17 }
 0x279   : > { %v936_v40 = vpop.f32.mrf.mxu1 }
 0x27b   : > { %v938_v15 = vpop.f32.mrf.mxu1 }
 0x27c   : > { %v981_v57 = vpack.c.bf16 %v938_v15, %v934_v39 }
 0x27d   : > { %v940_v16 = vpop.f32.mrf.mxu1 }
 0x27e   : > { %v982_v0 = vpack.c.bf16 %v940_v16, %v936_v40  ;;  %v2092_v22 = vmax.bf16 %v1671_v8, %v981_v57 }
 0x27f   : > { %v944_v18 = vpop.f32.mrf.mxu1 }
 0x280   : > { %v2087_v14 = vmax.bf16 %v1671_v8, %v982_v0 }
 0x281   : > { %v946_v19 = vpop.f32.mrf.mxu1 }
 0x283   : > { %v948_v20 = vpop.f32.mrf.mxu1 }
 0x284   : > { %v983_v55 = vpack.c.bf16 %v948_v20, %v944_v18 }
 0x285   : > { %v950_v23 = vpop.f32.mrf.mxu1 }
 0x286   : > { %v984_v50 = vpack.c.bf16 %v950_v23, %v946_v19  ;;  %v2084_v29 = vmax.bf16 %v1671_v8, %v983_v55 }
 0x287   : > { %v954_v24 = vpop.f32.mrf.mxu1 }
 0x288   : > { %v2079_v32 = vmax.bf16 %v1671_v8, %v984_v50 }
 0x289   : > { %v956_v26 = vpop.f32.mrf.mxu1 }
 0x28b   : > { %v958_v27 = vpop.f32.mrf.mxu1 }
 0x28c   : > { %v985_v53 = vpack.c.bf16 %v958_v27, %v954_v24 }
 0x28d   : > { %v960_v30 = vpop.f32.mrf.mxu1 }
 0x28e   : > { %v986_v60 = vpack.c.bf16 %v960_v30, %v956_v26  ;;  %v2076_v61 = vmax.bf16 %v1671_v8, %v985_v53 }
 0x28f   : > { %v964_v31 = vpop.f32.mrf.mxu1 }
 0x290   : > { %v2070_v1 = vmax.bf16 %v1671_v8, %v986_v60 }
 0x291   : > { %v966_v33 = vpop.f32.mrf.mxu1 }
 0x293   : > { %v968_v34 = vpop.f32.mrf.mxu1 }
 0x294   : > { %v987_v58 = vpack.c.bf16 %v968_v34, %v964_v31 }
 0x295   : > { %v970_v59 = vpop.f32.mrf.mxu1 }
 0x296   : > { %v988_v54 = vpack.c.bf16 %v970_v59, %v966_v33  ;;  %v2067_v63 = vmax.bf16 %v1671_v8, %v987_v58 }
 0x298   : > { %v2064_v62 = vmax.bf16 %v1671_v8, %v988_v54 }
 0x29a   : > { %1006 = vmatprep.subr.bf16.mxu1 %v2064_v62 }
 0x29b   : > { %1007 = vmatpush1.bf16.msra.mxu1 %v2067_v63 }
 0x29c   : > { %1008 = vmatprep.subr.bf16.mxu1 %v2070_v1 }
 0x29f   : > { %1009 = vmatpush1.bf16.msra.mxu1 %v2076_v61 }
 0x2a0   : > { %1010 = vmatprep.subr.bf16.mxu1 %v2079_v32 }
 0x2a3   : > { %1011 = vmatpush1.bf16.msra.mxu1 %v2084_v29 }
 0x2a4   : > { %1012 = vmatprep.subr.bf16.mxu1 %v2087_v14 }
 0x2a7   : > { %1013 = vmatpush1.bf16.msra.mxu1 %v2092_v22 }
 0x2a8   : > { %1014 = vmatprep.subr.bf16.mxu1 %v2095_v28 }
 0x2ab   : > { %1015 = vmatpush1.bf16.msra.mxu1 %v2100_v36 }
 0x2ac   : > { %1016 = vmatprep.subr.bf16.mxu1 %v2103_v56 }
 0x2af   : > { %1017 = vmatpush1.bf16.msra.mxu1 %v2108_v52 }
 0x2b0   : > { %1018 = vmatprep.subr.bf16.mxu1 %v2111_v2 }
 0x2b3   : > { %1019 = vmatpush1.bf16.msra.mxu1 %v2119_v49 }
 0x2b4   : > { %1020 = vmatprep.subr.bf16.mxu1 %v2125_v51 }
 0x2b7   : > { %1021 = vmatpush1.bf16.msra.mxu1 %v2133_v46 }
 0x2ba   : > { %1039 = vmatmul.mubr.bf16.vlgmr.msra.gmra.mxu1 %v1005_v45 }
 0x37a   : > { %v1040_v8 = vpop.f32.mrf.mxu1 }
 0x37b   : > { %v1471_v3 = vmul.f32 -1.442695, %v1040_v8 }
 0x37c   : > { %v1042_v4 = vpop.f32.mrf.mxu1 }
 0x37d   : > { %1591 = vpow2.f32 %v1471_v3  ;;  %v1472_v44 = vmul.f32 -1.442695, %v1042_v4 }
 0x37e   : > { %v1044_v47 = vpop.f32.mrf.mxu1 }
 0x37f   : > { %1593 = vpow2.f32 %v1472_v44 }
 0x380   : > { %v1045_v48 = vpop.f32.mrf.mxu1 }
 0x38a   : > { %v1592_v43 = vpop.eup %1591 }
 0x38b   : > { %v1053_v5 = vadd.f32 1.0, %v1592_v43 }
 0x38c   : > { %v1594_v6 = vpop.eup %1593 }
 0x38d   : > { %v1054_v7 = vadd.f32 1.0, %v1594_v6  ;;  %1595 = vrcp.f32 %v1053_v5 }
 0x38f   : > { %1597 = vrcp.f32 %v1054_v7 }
 0x39a   : > { %v1596_v11 = vpop.eup %1595 }
 0x39c   : > { %v1598_v13 = vpop.eup %1597 }
 0x39d   : > { %v1061_v37 = vcombine.low %v1596_v11, %v1598_v13 }
 0x39f   : > { %v1068_v39 = vrot.slane %v1061_v37, %v1067_v12  ;;  %1085 = sbr.rel (%p1473_p0) target bundleno = 941 (0x3ad), region = 63 }
 0x3a1   : > { %v1075_v40 = vrot.slane %v1068_v39, %v1067_v12 }
 0x3a3   : > { %1081 = vst.msk [vmem:[%s320_s10] sm:$0x3] %vm1079_vm1, %v1075_v40 }
 0x3a4   : > { %vm1086_vm2 = vcmask 7168   ;;  %v1673_v15 = vmov 0.0  }
 0x3a5   : > { %1087 = vst.msk [vmem:[%s2149_s15] sm:$0xff] %vm1086_vm2, %v1673_v15  ;;  %1088 = vst.msk [vmem:[%s2149_s15 + $0x8] sm:$0xff] %vm1086_vm2, %v1673_v15 }
 0x3a6   : > { %1089 = vst.msk [vmem:[%s2149_s15 + $0x10] sm:$0xff] %vm1086_vm2, %v1673_v15  ;;  %1090 = vst.msk [vmem:[%s2149_s15 + $0x18] sm:$0xff] %vm1086_vm2, %v1673_v15 }
 0x3a7   : > { %1091 = vst.msk [vmem:[%s2149_s15 + $0x20] sm:$0xff] %vm1086_vm2, %v1673_v15  ;;  %1092 = vst.msk [vmem:[%s2149_s15 + $0x28] sm:$0xff] %vm1086_vm2, %v1673_v15 }
 0x3a8   : > { %1093 = vst.msk [vmem:[%s2149_s15 + $0x30] sm:$0xff] %vm1086_vm2, %v1673_v15  ;;  %1094 = vst.msk [vmem:[%s2149_s15 + $0x38] sm:$0xff] %vm1086_vm2, %v1673_v15 }
 0x3a9   : > { %1095 = vst.msk [vmem:[%s2149_s15 + $0x40] sm:$0xff] %vm1086_vm2, %v1673_v15  ;;  %1096 = vst.msk [vmem:[%s2149_s15 + $0x48] sm:$0xff] %vm1086_vm2, %v1673_v15 }
 0x3aa   : > { %1097 = vst.msk [vmem:[%s2149_s15 + $0x50] sm:$0xff] %vm1086_vm2, %v1673_v15  ;;  %1098 = vst.msk [vmem:[%s2149_s15 + $0x58] sm:$0xff] %vm1086_vm2, %v1673_v15 }
 0x3ab   : > { %1099 = vst.msk [vmem:[%s2149_s15 + $0x60] sm:$0xff] %vm1086_vm2, %v1673_v15  ;;  %1100 = vst.msk [vmem:[%s2149_s15 + $0x68] sm:$0xff] %vm1086_vm2, %v1673_v15 }
 0x3ac   : > { %1101 = vst.msk [vmem:[%s2149_s15 + $0x70] sm:$0xff] %vm1086_vm2, %v1673_v15  ;;  %1102 = vst.msk [vmem:[%s2149_s15 + $0x78] sm:$0xff] %vm1086_vm2, %v1673_v15 }
 0x3ad PF: > { %v1123_v16 = vunpack.c.l.bf16 %v2119_v49  ;;  %v1124_v18 = vunpack.c.l.bf16 %v2111_v2  ;;  %v1119_v19 = vunpack.c.l.bf16 %v2133_v46  ;;  %v1120_v20 = vunpack.c.l.bf16 %v2125_v51  ;;  %v1105_v7 = vld [vmem:[%s2149_s15 + $0x10] sm:$0xff]  ;;  %v1103_v41 = vld [vmem:[%s2149_s15] sm:$0xff]  ;;  %v1106_v11 = vld [vmem:[%s2149_s15 + $0x18] sm:$0xff] }
 0x3ae   : > { %v1125_v23 = vunpack.c.h.bf16 %v2119_v49  ;;  %v1126_v24 = vunpack.c.h.bf16 %v2111_v2  ;;  %v1121_v26 = vunpack.c.h.bf16 %v2133_v46  ;;  %v1122_v27 = vunpack.c.h.bf16 %v2125_v51  ;;  %v1104_v13 = vld [vmem:[%s2149_s15 + $0x8] sm:$0xff] }
 0x3af   : > { %v1157_v30 = vadd.f32 %v1124_v18, %v1123_v16  ;;  %v1151_v31 = vadd.f32 %v1120_v20, %v1119_v19  ;;  %v1129_v33 = vunpack.c.h.bf16 %v2108_v52  ;;  %v1130_v34 = vunpack.c.h.bf16 %v2103_v56  ;;  %v1108_v18 = vld [vmem:[%s2149_s15 + $0x28] sm:$0xff]  ;;  %v1107_v20 = vld [vmem:[%s2149_s15 + $0x20] sm:$0xff] }
 0x3b0   : > { %v1160_v58 = vadd.f32 %v1126_v24, %v1125_v23  ;;  %v1154_v59 = vadd.f32 %v1122_v27, %v1121_v26  ;;  %v1127_v60 = vunpack.c.l.bf16 %v2108_v52  ;;  %v1128_v54 = vunpack.c.l.bf16 %v2103_v56 }
 0x3b1   : > { %1158 = vadd.xlane.f32.xlu1 %v1157_v30  ;;  %1152 = vadd.xlane.f32.xlu0 %v1151_v31  ;;  %v1166_v53 = vadd.f32 %v1130_v34, %v1129_v33  ;;  %v1133_v50 = vunpack.c.h.bf16 %v2100_v36  ;;  %v1134_v0 = vunpack.c.h.bf16 %v2095_v28  ;;  %v1131_v57 = vunpack.c.l.bf16 %v2100_v36  ;;  %v1110_v31 = vld [vmem:[%s2149_s15 + $0x38] sm:$0xff]  ;;  %v1109_v34 = vld [vmem:[%s2149_s15 + $0x30] sm:$0xff] }
 0x3b2   : > { %v1163_v55 = vadd.f32 %v1128_v54, %v1127_v60  ;;  %v1132_v17 = vunpack.c.l.bf16 %v2095_v28  ;;  %v1137_v21 = vunpack.c.h.bf16 %v2092_v22  ;;  %v1138_v25 = vunpack.c.h.bf16 %v2087_v14 }
 0x3b3   : > { %v1172_v35 = vadd.f32 %v1134_v0, %v1133_v50  ;;  %v1135_v52 = vunpack.c.l.bf16 %v2092_v22  ;;  %v1136_v2 = vunpack.c.l.bf16 %v2087_v14  ;;  %v1141_v51 = vunpack.c.h.bf16 %v2084_v29  ;;  %v1112_v50 = vld [vmem:[%s2149_s15 + $0x48] sm:$0xff]  ;;  %v1111_v0 = vld [vmem:[%s2149_s15 + $0x40] sm:$0xff] }
 0x3b4   : > { %v1169_v56 = vadd.f32 %v1132_v17, %v1131_v57  ;;  %v1178_v49 = vadd.f32 %v1138_v25, %v1137_v21  ;;  %v1142_v28 = vunpack.c.h.bf16 %v2079_v32  ;;  %v1139_v46 = vunpack.c.l.bf16 %v2084_v29 }
 0x3b5   : > { %1161 = vadd.xlane.f32.xlu1 %v1160_v58  ;;  %1155 = vadd.xlane.f32.xlu0 %v1154_v59  ;;  %v1175_v36 = vadd.f32 %v1136_v2, %v1135_v52  ;;  %v1140_v45 = vunpack.c.l.bf16 %v2079_v32  ;;  %v1145_v8 = vunpack.c.h.bf16 %v2076_v61  ;;  %v1146_v3 = vunpack.c.h.bf16 %v2070_v1  ;;  %v1113_v2 = vld [vmem:[%s2149_s15 + $0x50] sm:$0xff] }
 0x3b6   : > { %v1184_v22 = vadd.f32 %v1142_v28, %v1141_v51  ;;  %v1143_v4 = vunpack.c.l.bf16 %v2076_v61  ;;  %v1144_v44 = vunpack.c.l.bf16 %v2070_v1  ;;  %v1149_v48 = vunpack.c.h.bf16 %v2067_v63 }
 0x3b7   : > { %v1181_v14 = vadd.f32 %v1140_v45, %v1139_v46  ;;  %v1190_v47 = vadd.f32 %v1146_v3, %v1145_v8  ;;  %v1150_v29 = vunpack.c.h.bf16 %v2064_v62  ;;  %v1147_v43 = vunpack.c.l.bf16 %v2067_v63  ;;  %v1116_v45 = vld [vmem:[%s2149_s15 + $0x68] sm:$0xff]  ;;  %v1115_v3 = vld [vmem:[%s2149_s15 + $0x60] sm:$0xff] }
 0x3b8   : > { %v1187_v32 = vadd.f32 %v1144_v44, %v1143_v4  ;;  %v1148_v5 = vunpack.c.l.bf16 %v2064_v62  ;;  %vm1231_vm3 = vcmask 7168  }
 0x3b9   : > { %1167 = vadd.xlane.f32.xlu1 %v1166_v53  ;;  %1164 = vadd.xlane.f32.xlu0 %v1163_v55  ;;  %v1196_v61 = vadd.f32 %v1150_v29, %v1149_v48  ;;  %v1118_v48 = vld [vmem:[%s2149_s15 + $0x78] sm:$0xff]  ;;  %v1117_v29 = vld [vmem:[%s2149_s15 + $0x70] sm:$0xff] }
 0x3ba   : > { %v1193_v1 = vadd.f32 %v1148_v5, %v1147_v43 }
 0x3bd   : > { %1173 = vadd.xlane.f32.xlu1 %v1172_v35  ;;  %1170 = vadd.xlane.f32.xlu0 %v1169_v56  ;;  %v1114_v56 = vld [vmem:[%s2149_s15 + $0x58] sm:$0xff] }
 0x3c1   : > { %1179 = vadd.xlane.f32.xlu1 %v1178_v49  ;;  %1176 = vadd.xlane.f32.xlu0 %v1175_v36 }
 0x3c5   : > { %1185 = vadd.xlane.f32.xlu1 %v1184_v22  ;;  %1182 = vadd.xlane.f32.xlu0 %v1181_v14 }
 0x3c9   : > { %1191 = vadd.xlane.f32.xlu1 %v1190_v47  ;;  %1188 = vadd.xlane.f32.xlu0 %v1187_v32 }
 0x3cd   : > { %1197 = vadd.xlane.f32.xlu1 %v1196_v61  ;;  %1194 = vadd.xlane.f32.xlu0 %v1193_v1 }
 0x43a   : > { %v1159_v6 = vpop.xlane.xlu1 %1158  ;;  %v1153_v38 = vpop.xlane.xlu0 %1152 }
 0x43b   : > { %v1201_v42 = vmul.f32 0.0009765625, %v1159_v6  ;;  %v1199_v9 = vmul.f32 0.0009765625, %v1153_v38 }
 0x43d   : > { %v1217_v62 = vadd.f32 %v1201_v42, %v1105_v7  ;;  %v1215_v63 = vadd.f32 %v1199_v9, %v1103_v41 }
 0x43e   : > { %v1162_v10 = vpop.xlane.xlu1 %1161  ;;  %v1156_v12 = vpop.xlane.xlu0 %1155 }
 0x43f   : > { %1234 = vst.msk [vmem:[%s2149_s15 + $0x10] sm:$0xff] %vm1231_vm3, %v1217_v62  ;;  %1232 = vst.msk [vmem:[%s2149_s15] sm:$0xff] %vm1231_vm3, %v1215_v63  ;;  %v1202_v37 = vmul.f32 0.0009765625, %v1162_v10  ;;  %v1200_v39 = vmul.f32 0.0009765625, %v1156_v12 }
 0x441   : > { %v1218_v40 = vadd.f32 %v1202_v37, %v1106_v11  ;;  %v1216_v15 = vadd.f32 %v1200_v39, %v1104_v13 }
 0x442   : > { %v1168_v16 = vpop.xlane.xlu1 %1167  ;;  %v1165_v19 = vpop.xlane.xlu0 %1164 }
 0x443   : > { %1235 = vst.msk [vmem:[%s2149_s15 + $0x18] sm:$0xff] %vm1231_vm3, %v1218_v40  ;;  %1233 = vst.msk [vmem:[%s2149_s15 + $0x8] sm:$0xff] %vm1231_vm3, %v1216_v15  ;;  %v1204_v23 = vmul.f32 0.0009765625, %v1168_v16  ;;  %v1203_v24 = vmul.f32 0.0009765625, %v1165_v19 }
 0x445   : > { %v1220_v26 = vadd.f32 %v1204_v23, %v1108_v18  ;;  %v1219_v27 = vadd.f32 %v1203_v24, %v1107_v20 }
 0x446   : > { %v1174_v30 = vpop.xlane.xlu1 %1173  ;;  %v1171_v33 = vpop.xlane.xlu0 %1170 }
 0x447   : > { %1237 = vst.msk [vmem:[%s2149_s15 + $0x28] sm:$0xff] %vm1231_vm3, %v1220_v26  ;;  %1236 = vst.msk [vmem:[%s2149_s15 + $0x20] sm:$0xff] %vm1231_vm3, %v1219_v27  ;;  %v1206_v58 = vmul.f32 0.0009765625, %v1174_v30  ;;  %v1205_v59 = vmul.f32 0.0009765625, %v1171_v33 }
 0x449   : > { %v1222_v60 = vadd.f32 %v1206_v58, %v1110_v31  ;;  %v1221_v54 = vadd.f32 %v1205_v59, %v1109_v34 }
 0x44a   : > { %v1180_v53 = vpop.xlane.xlu1 %1179  ;;  %v1177_v55 = vpop.xlane.xlu0 %1176 }
 0x44b   : > { %1239 = vst.msk [vmem:[%s2149_s15 + $0x38] sm:$0xff] %vm1231_vm3, %v1222_v60  ;;  %1238 = vst.msk [vmem:[%s2149_s15 + $0x30] sm:$0xff] %vm1231_vm3, %v1221_v54  ;;  %v1208_v57 = vmul.f32 0.0009765625, %v1180_v53  ;;  %v1207_v17 = vmul.f32 0.0009765625, %v1177_v55 }
 0x44d   : > { %v1224_v21 = vadd.f32 %v1208_v57, %v1112_v50  ;;  %v1223_v25 = vadd.f32 %v1207_v17, %v1111_v0 }
 0x44e   : > { %v1186_v35 = vpop.xlane.xlu1 %1185  ;;  %v1183_v52 = vpop.xlane.xlu0 %1182 }
 0x44f   : > { %1241 = vst.msk [vmem:[%s2149_s15 + $0x48] sm:$0xff] %vm1231_vm3, %v1224_v21  ;;  %1240 = vst.msk [vmem:[%s2149_s15 + $0x40] sm:$0xff] %vm1231_vm3, %v1223_v25  ;;  %v1210_v49 = vmul.f32 0.0009765625, %v1186_v35  ;;  %v1209_v51 = vmul.f32 0.0009765625, %v1183_v52 }
 0x451   : > { %v1226_v36 = vadd.f32 %v1210_v49, %v1114_v56  ;;  %v1225_v28 = vadd.f32 %v1209_v51, %v1113_v2 }
 0x452   : > { %v1192_v46 = vpop.xlane.xlu1 %1191  ;;  %v1189_v8 = vpop.xlane.xlu0 %1188 }
 0x453   : > { %1243 = vst.msk [vmem:[%s2149_s15 + $0x58] sm:$0xff] %vm1231_vm3, %v1226_v36  ;;  %1242 = vst.msk [vmem:[%s2149_s15 + $0x50] sm:$0xff] %vm1231_vm3, %v1225_v28  ;;  %v1212_v22 = vmul.f32 0.0009765625, %v1192_v46  ;;  %v1211_v14 = vmul.f32 0.0009765625, %v1189_v8 }
 0x455   : > { %v1228_v4 = vadd.f32 %v1212_v22, %v1116_v45  ;;  %v1227_v44 = vadd.f32 %v1211_v14, %v1115_v3 }
 0x456   : > { %v1198_v47 = vpop.xlane.xlu1 %1197  ;;  %v1195_v32 = vpop.xlane.xlu0 %1194 }
 0x457   : > { %1245 = vst.msk [vmem:[%s2149_s15 + $0x68] sm:$0xff] %vm1231_vm3, %v1228_v4  ;;  %1244 = vst.msk [vmem:[%s2149_s15 + $0x60] sm:$0xff] %vm1231_vm3, %v1227_v44  ;;  %v1214_v43 = vmul.f32 0.0009765625, %v1198_v47  ;;  %v1213_v5 = vmul.f32 0.0009765625, %v1195_v32 }
 0x459   : > { %v1230_v61 = vadd.f32 %v1214_v43, %v1118_v48  ;;  %v1229_v1 = vadd.f32 %v1213_v5, %v1117_v29 }
 0x45b   : > { %1247 = vst.msk [vmem:[%s2149_s15 + $0x78] sm:$0xff] %vm1231_vm3, %v1230_v61  ;;  %1246 = vst.msk [vmem:[%s2149_s15 + $0x70] sm:$0xff] %vm1231_vm3, %v1229_v1 }
 0x45c PF: > { %s16_s26 = sadd.s32 1, %s1669_s26   ;;  %s2305_s28 = sld [smem:[#allocation3_spill]] }
 0x45d   : > { %p13_p1 = scmp.ge.s32.totalorder %s16_s26, 10   ;;  %s2306_s18 = smov %s1641_s19 }
 0x45e   : > { %s2307_s19 = smov %s1771_s13  ;;  %s2308_s20 = smov %s1657_s23 }
 0x45f   : > { %s2309_s21 = smov %s1661_s24  ;;  %s2310_s22 = smov %s1665_s25 }
 0x460   : > { %s2311_s23 = smov %s2315_s27  ;;  %s2313_s25 = smov %s2323_s30 }
 0x461   :  { %15 = sbr.rel (!%p13_p1) target bundleno = 5 (0x5), region = 110 }
 0x462   : > { %s2312_s24 = smov %s2305_s28 }

</bundles_post_ra>
